<compile_context>
chip_gen: v6e
topology: v6e:2x2x1
jax: 0.10.0
libtpu: 0.0.40
codegen_flags: <defaults>
</compile_context>

<pallas_src>
import jax
import jax.numpy as jnp
from jax.experimental import pallas as pl
from jax.experimental.pallas import tpu as pltpu


def _make_kernel(num_inputs: int, mxu_dtype):
    def kernel(*refs):
        fw_ref = refs[0]                      # (num_inputs,) f32 in SMEM
        x_refs = refs[1:1 + num_inputs]       # each (C1, tile_hw)
        w_ref, b_ref, o_ref = refs[1 + num_inputs:]

        # Weighted fusion + ReLU, accumulated in f32 on the VPU.
        fused = fw_ref[0] * x_refs[0][...].astype(jnp.float32)
        for i in range(1, num_inputs):
            fused = fused + fw_ref[i] * x_refs[i][...].astype(jnp.float32)
        fused = jnp.maximum(fused, 0.0)

        # 1x1 conv == channel matmul on the MXU; BN scale is folded into w_ref.
        # For bf16/f16 models, feed the MXU half-precision operands (f32 accumulate).
        y = jnp.dot(w_ref[...], fused.astype(mxu_dtype),
                    preferred_element_type=jnp.float32)
        y = y + b_ref[...]                    # BN bias, (C2, 1) broadcast over lanes
        o_ref[...] = (y * jax.nn.sigmoid(y)).astype(o_ref.dtype)   # SiLU

    return kernel


def concat_bifpn(xs, fusion_w, conv_w, bn_gamma, bn_beta, bn_mean, bn_var,
                 *, fuse_eps=1e-4, bn_eps=1e-5):
    """Fused Concat_bifpn forward. xs: list of 2 or 3 NCHW arrays (same shape)."""
    num_inputs = len(xs)
    assert num_inputs in (2, 3), "Concat_bifpn supports 2 or 3 inputs"
    n, c1, h, w_sp = xs[0].shape
    c2 = conv_w.shape[0]
    hw = h * w_sp
    out_dtype = xs[0].dtype

    # MXU operand dtype: keep half-precision inputs half-precision for the matmul.
    mxu_dtype = out_dtype if out_dtype in (jnp.bfloat16, jnp.float16) else jnp.float32

    # --- tiny parameter math (O(C1*C2)) done once in the wrapper ---------------
    w_norm = (fusion_w / (jnp.sum(fusion_w) + fuse_eps)).astype(jnp.float32)
    scale = (bn_gamma / jnp.sqrt(bn_var + bn_eps)).astype(jnp.float32)        # (C2,)
    w_folded = (conv_w.astype(jnp.float32) * scale[:, None]).astype(mxu_dtype)  # (C2,C1)
    bias = (bn_beta - bn_mean * scale).astype(jnp.float32).reshape(c2, 1)     # (C2, 1)

    # --- free view: NCHW -> (N, C1, HW) ----------------------------------------
    xs3 = [x.reshape(n, c1, hw) for x in xs]

    # --- HW-tile sizing: multi-MiB blocks, VMEM-budgeted for all chips ----------
    LANE = 128
    in_itemsize = jnp.dtype(out_dtype).itemsize
    bytes_per_col = in_itemsize * num_inputs * c1 + jnp.dtype(out_dtype).itemsize * c2
    target_step_bytes = 4 * 1024 * 1024                # ~4 MiB/step, ~8-9 MiB dbl-buffered
    max_tile_hw = max(LANE, (target_step_bytes // bytes_per_col) // LANE * LANE)
    if hw <= max_tile_hw:
        tile_hw = hw            # full lane extent: no alignment constraint, any hw allowed
    else:
        tile_hw = max_tile_hw   # multiple of 128; ragged tail handled by Pallas masking
    n_hw_tiles = pl.cdiv(hw, tile_hw)
    grid = (n, n_hw_tiles)

    x_spec = pl.BlockSpec((None, c1, tile_hw), lambda b, t: (b, 0, t))
    in_specs = ([pl.BlockSpec(memory_space=pltpu.MemorySpace.SMEM)]   # fusion weights
                + [x_spec] * num_inputs
                + [pl.BlockSpec((c2, c1), lambda b, t: (0, 0)),       # folded conv weight
                   pl.BlockSpec((c2, 1), lambda b, t: (0, 0))])       # folded BN bias
    out_spec = pl.BlockSpec((None, c2, tile_hw), lambda b, t: (b, 0, t))

    cost = pl.CostEstimate(
        flops=int(n * hw * (2 * num_inputs * c1 + 2 * c1 * c2 + 4 * c2)),
        transcendentals=int(n * hw * c2),                 # sigmoid exp per output elem
        bytes_accessed=int(in_itemsize * n * hw * (num_inputs * c1 + c2)),
    )

    out3 = pl.pallas_call(
        _make_kernel(num_inputs, mxu_dtype),
        out_shape=jax.ShapeDtypeStruct((n, c2, hw), out_dtype),
        grid_spec=pltpu.PrefetchScalarGridSpec(
            num_scalar_prefetch=0,
            grid=grid,
            in_specs=in_specs,
            out_specs=out_spec,
        ),
        compiler_params=pltpu.CompilerParams(
            dimension_semantics=("parallel", "parallel"),
        ),
        cost_estimate=cost,
    )(w_norm, *xs3, w_folded, bias)

    return out3.reshape(n, c2, h, w_sp)


if __name__ == "__main__":
    key = jax.random.PRNGKey(0)
    keys = jax.random.split(key, 10)
    N, C1, C2, H, W = 2, 4, 8, 16, 16

    x0 = jax.random.normal(keys[0], (N, C1, H, W), jnp.float32)
    x1 = jax.random.normal(keys[1], (N, C1, H, W), jnp.float32)
    x2 = jax.random.normal(keys[2], (N, C1, H, W), jnp.float32)

    fusion_w2 = jnp.abs(jax.random.normal(keys[3], (2,), jnp.float32)) + 0.5
    fusion_w3 = jnp.abs(jax.random.normal(keys[4], (3,), jnp.float32)) + 0.5
    conv_w = jax.random.normal(keys[5], (C2, C1), jnp.float32) * 0.5
    gamma = jnp.abs(jax.random.normal(keys[6], (C2,), jnp.float32)) + 0.5
    beta = jax.random.normal(keys[7], (C2,), jnp.float32) * 0.1
    mean = jax.random.normal(keys[8], (C2,), jnp.float32) * 0.1
    var = jnp.abs(jax.random.normal(keys[9], (C2,), jnp.float32)) + 0.5

    def reference(xs, fw):
        w_n = fw / (jnp.sum(fw) + 1e-4)
        fused = sum(w_n[i] * xs[i] for i in range(len(xs)))
        fused = jnp.maximum(fused, 0.0)
        conv = jnp.einsum('oc,nchw->nohw', conv_w, fused)
        inv = gamma / jnp.sqrt(var + 1e-5)
        y = conv * inv[None, :, None, None] + (beta - mean * inv)[None, :, None, None]
        return y * jax.nn.sigmoid(y)

    # 2-input branch (uses self.w1 in the PyTorch module)
    y2 = jax.block_until_ready(
        concat_bifpn([x0, x1], fusion_w2, conv_w, gamma, beta, mean, var))
    r2 = reference([x0, x1], fusion_w2)
    assert y2.shape == (N, C2, H, W) and y2.dtype == x0.dtype
    assert jnp.allclose(y2, r2, atol=1e-3, rtol=1e-3)

    # 3-input branch (uses self.w2)
    y3 = jax.block_until_ready(
        concat_bifpn([x0, x1, x2], fusion_w3, conv_w, gamma, beta, mean, var))
    r3 = reference([x0, x1, x2], fusion_w3)
    assert y3.shape == (N, C2, H, W) and y3.dtype == x0.dtype
    assert jnp.allclose(y3, r3, atol=1e-3, rtol=1e-3)

    print("KERNEL_OK")
</pallas_src>

<mosaic_0001>
module attributes {stable_mosaic.version = 11 : i64} {
  func.func @kernel(%arg0: i32, %arg1: i32, %arg2: memref<2xf32, #tpu.memory_space<smem>>, %arg3: memref<1x4x256xf32, #tpu.memory_space<vmem>>, %arg4: memref<1x4x256xf32, #tpu.memory_space<vmem>>, %arg5: memref<8x4xf32, #tpu.memory_space<vmem>>, %arg6: memref<8x1xf32, #tpu.memory_space<vmem>>, %arg7: memref<1x8x256xf32, #tpu.memory_space<vmem>>) attributes {dimension_semantics = [#tpu.dimension_semantics<parallel>, #tpu.dimension_semantics<parallel>], iteration_bounds = array<i64: 2, 1>, scalar_prefetch = 0 : i64, scratch_operands = 0 : i64, tpu.core_type = #tpu.core_type<tc>, window_params = [{transform_indices = @transform_0, window_bounds = array<i64: 2>}, {transform_indices = @transform_1, window_bounds = array<i64: 1, 4, 256>}, {transform_indices = @transform_2, window_bounds = array<i64: 1, 4, 256>}, {pipeline_mode = #tpu.pipeline_mode<synchronous>, transform_indices = @transform_3, window_bounds = array<i64: 8, 4>}, {pipeline_mode = #tpu.pipeline_mode<synchronous>, transform_indices = @transform_4, window_bounds = array<i64: 8, 1>}, {transform_indices = @transform_5, window_bounds = array<i64: 1, 8, 256>}]} {
    %c0 = arith.constant 0 : index
    %0 = memref.load %arg2[%c0] : memref<2xf32, #tpu.memory_space<smem>>
    %c0_0 = arith.constant 0 : index
    %c0_1 = arith.constant 0 : index
    %c0_2 = arith.constant 0 : index
    %1 = vector.load %arg3[%c0_0, %c0_1, %c0_2] : memref<1x4x256xf32, #tpu.memory_space<vmem>>, vector<1x4x256xf32>
    %2 = vector.shape_cast %1 : vector<1x4x256xf32> to vector<4x256xf32>
    %3 = vector.broadcast %0 : f32 to vector<4x256xf32>
    %4 = arith.mulf %3, %2 : vector<4x256xf32>
    %c1 = arith.constant 1 : index
    %5 = memref.load %arg2[%c1] : memref<2xf32, #tpu.memory_space<smem>>
    %c0_3 = arith.constant 0 : index
    %c0_4 = arith.constant 0 : index
    %c0_5 = arith.constant 0 : index
    %6 = vector.load %arg4[%c0_3, %c0_4, %c0_5] : memref<1x4x256xf32, #tpu.memory_space<vmem>>, vector<1x4x256xf32>
    %7 = vector.shape_cast %6 : vector<1x4x256xf32> to vector<4x256xf32>
    %8 = vector.broadcast %5 : f32 to vector<4x256xf32>
    %9 = arith.mulf %8, %7 : vector<4x256xf32>
    %10 = arith.addf %4, %9 : vector<4x256xf32>
    %cst = arith.constant 0.000000e+00 : f32
    %11 = vector.broadcast %cst : f32 to vector<4x256xf32>
    %12 = arith.maximumf %10, %11 : vector<4x256xf32>
    %c0_6 = arith.constant 0 : index
    %c0_7 = arith.constant 0 : index
    %13 = vector.load %arg5[%c0_6, %c0_7] : memref<8x4xf32, #tpu.memory_space<vmem>>, vector<8x4xf32>
    %cst_8 = arith.constant dense<0.000000e+00> : vector<8x256xf32>
    %14 = tpu.matmul %13, %12, %cst_8 {dimension_numbers = #tpu.dot_dimension_numbers<[1], [0], [0], [1], [0, 0, 1, 1], [], []>} : vector<8x4xf32>, vector<4x256xf32>, vector<8x256xf32> -> vector<8x256xf32>
    %c0_9 = arith.constant 0 : index
    %c0_10 = arith.constant 0 : index
    %15 = vector.load %arg6[%c0_9, %c0_10] : memref<8x1xf32, #tpu.memory_space<vmem>>, vector<8x1xf32>
    %16 = vector.broadcast %15 : vector<8x1xf32> to vector<8x256xf32>
    %17 = arith.addf %14, %16 : vector<8x256xf32>
    %18 = arith.negf %17 : vector<8x256xf32>
    %19 = math.exp %18 : vector<8x256xf32>
    %cst_11 = arith.constant 1.000000e+00 : f32
    %20 = vector.broadcast %cst_11 : f32 to vector<8x256xf32>
    %21 = arith.addf %20, %19 : vector<8x256xf32>
    %22 = arith.divf %20, %21 : vector<8x256xf32>
    %23 = arith.mulf %17, %22 : vector<8x256xf32>
    %c0_12 = arith.constant 0 : index
    %c0_13 = arith.constant 0 : index
    %c0_14 = arith.constant 0 : index
    %24 = vector.load %arg7[%c0_12, %c0_13, %c0_14] : memref<1x8x256xf32, #tpu.memory_space<vmem>>, vector<1x8x256xf32>
    %25 = vector.shape_cast %24 : vector<1x8x256xf32> to vector<8x256xf32>
    %26 = vector.shape_cast %23 : vector<8x256xf32> to vector<1x8x256xf32>
    tpu.vector_store %arg7[%c0_12, %c0_13, %c0_14], %26 {strides = array<i32>} : memref<1x8x256xf32, #tpu.memory_space<vmem>>, vector<1x8x256xf32>,
    return
  }
  func.func @transform_0(%arg0: i32, %arg1: i32) -> i32 {
    %c0_i32 = arith.constant 0 : i32
    %c0_i32_0 = arith.constant 0 : i32
    return %c0_i32 : i32
  }
  func.func @transform_1(%arg0: i32, %arg1: i32) -> (i32, i32, i32) {
    %c0_i32 = arith.constant 0 : i32
    %c0_i32_0 = arith.constant 0 : i32
    return %arg0, %c0_i32, %arg1 : i32, i32, i32
  }
  func.func @transform_2(%arg0: i32, %arg1: i32) -> (i32, i32, i32) {
    %c0_i32 = arith.constant 0 : i32
    %c0_i32_0 = arith.constant 0 : i32
    return %arg0, %c0_i32, %arg1 : i32, i32, i32
  }
  func.func @transform_3(%arg0: i32, %arg1: i32) -> (i32, i32) {
    %c0_i32 = arith.constant 0 : i32
    %c0_i32_0 = arith.constant 0 : i32
    %c0_i32_1 = arith.constant 0 : i32
    return %c0_i32, %c0_i32_0 : i32, i32
  }
  func.func @transform_4(%arg0: i32, %arg1: i32) -> (i32, i32) {
    %c0_i32 = arith.constant 0 : i32
    %c0_i32_0 = arith.constant 0 : i32
    %c0_i32_1 = arith.constant 0 : i32
    return %c0_i32, %c0_i32_0 : i32, i32
  }
  func.func @transform_5(%arg0: i32, %arg1: i32) -> (i32, i32, i32) {
    %c0_i32 = arith.constant 0 : i32
    %c0_i32_0 = arith.constant 0 : i32
    return %arg0, %c0_i32, %arg1 : i32, i32, i32
  }
}

</mosaic_0001>

<bundles_post_ra>
// kernel: tpu_custom_call.1
= control target key start
LH: loop header
LB: loop body
LE: loop exit
PB: predicated region body
PF: predicated region fallthrough
CT: control target
= control target key end

     0   :  { %s1006_s0 = inlined_call_operand.vmem [shape: f32[2], index: 0, kind: input, shape index: {}]   ;;  %s1007_s1 = inlined_call_operand.vmem [shape: f32[2,4,256], index: 1, kind: input, shape index: {}]   ;;  %s1008_s2 = inlined_call_operand.hbm [shape: f32[2,4,256], index: 2, kind: input, shape index: {}]   ;;  %s1009_s3 = inlined_call_operand.vmem [shape: f32[8,4], index: 3, kind: input, shape index: {}]   ;;  %s1010_s4 = inlined_call_operand.vmem [shape: f32[8,1], index: 4, kind: input, shape index: {}]   ;;  %s1011_s5 = inlined_call_operand.hbm [shape: f32[2,8,256], index: 5, kind: output, shape index: {}]  }
   0x1   :  { %1013 = sst [smem:[#allocation11_spill]] %s1006_s0 }
   0x2   :  { %10 = vsyncpa [#allocation5], 0 }
   0x3   :  { %11 = vsyncpa [#allocation3], 0 }
   0x4   :  { %13 = vsyncpa [#allocation3 + $0x1], 0 }
   0x5   :  { %14 = vsyncpa [#allocation4], 0 }
   0x6   :  { %16 = vsyncpa [#allocation4 + $0x1], 0  ;;  %s833_s18 = smov 0   ;;  %s835_s19 = smov 0  }
   0x7   :  { %s837_s20 = smov 0   ;;  %s839_s21 = smov 0  }
   0x8   :  { %s841_s22 = smov 0   ;;  %s843_s23 = smov 0  }
   0x9 LB: > { %s557_s24 = sadd.s32 4294967295, %s796_s23   ;;  %s558_s25 = sadd.s32 4294967294, %s796_s23   ;;  %s796_s23 = sphi %s843_s23, %s22_s23   ;;  %s792_s22 = sphi %s841_s22, %s1030_s22   ;;  %s788_s21 = sphi %s839_s21, %s1029_s21   ;;  %s784_s20 = sphi %s837_s20, %s1028_s20   ;;  %s780_s19 = sphi %s835_s19, %s1027_s19   ;;  %s776_s18 = sphi %s833_s18, %s1026_s18  }
   0xa   : > { %p105_p0 = scmp.ne.s32.totalorder %s780_s19, %s776_s18  ;;  %p867_p1 = scmp.eq.s32.totalorder %s557_s24, 0 }
   0xb   : > { %p871_p2 = scmp.eq.s32.totalorder %s557_s24, 1  ;;  %p179_p3 = scmp.eq.s32.totalorder %s558_s25, 1 }
   0xc   : > { %p877_p4 = por %p867_p1, %p105_p0  ;;  %p559_p5 = scmp.ge.s32.totalorder %s796_s23, 1 }
   0xd   : > { %p882_p6 = por %p179_p3, %p105_p0  ;;  %p186_p7 = scmp.lt.s32.totalorder %s796_s23, 3 }
   0xe   : > { %s1016_s28 = scalar_select %p877_p4, 1, 0 }
   0xf   : > { %s1017_s29 = scalar_select %p882_p6, 1, 0 }
  0x10   : > { %s1018_s0 = sld [smem:[#allocation11_spill]]  ;;  %p890_p8 = pnand %p559_p5, %p186_p7 }
  0x11   : > { %s34_s10 = sadd.s32 1, %s792_s22  ;;  %s92_s11 = sadd.s32 1, %s784_s20 }
  0x12   : > { %p593_p10 = pneg %p890_p8  ;;  %p36_p12 = scmp.ge.s32.totalorder %s34_s10, 2 }
  0x14   : > { %p899_p11 = pnand %p593_p10, %p867_p1 }
  0x16   : > { %s199_s7 = sshll.u32 %s1018_s0, 4  ;;  %p671_p0 = pneg %p899_p11  ;;  %s200_s7 = int_to_ptr.vmem [resolvable:$true] %s199_s7 }
  0x17   : > { %s669_s12 = scalar_lea.vmem %s200_s7, 16  ;;  %p677_p7 = scmp.lt.s32.totalorder %s200_s7, %s200_s7 }
  0x18   : > { %p670_p13 = scmp.ne.s32.totalorder %s200_s7, %s669_s12  ;;  %p678_p6 = scmp.lt.s32.totalorder %s669_s12, %s669_s12 }
  0x1a   : > { %p672_p3 = pnand %p671_p0, %p670_p13  ;;  %p679_p9 = por %p678_p6, %p677_p7 }
  0x1c   : > { %p673_p5 = pneg %p672_p3 }
  0x1e   : > { %p680_p4 = pnand %p679_p9, %p673_p5 }
  0x20   : > { %683 = shalt.err (!%p680_p4)
}
  0x21   : > { %s798_s13 = smov [#allocation2]   ;;  %s1032_s10 = smov (%p36_p12, %s34_s10), 0 }
  0x22   : > { %596 = dma.vmem_to_smem (!%p899_p11), %s200_s7, 16, %s798_s13, [#allocation5]  }
  0x23   : > { %p99_p10 = scmp.ne.s32.totalorder %s784_s20, %s780_s19  ;;  %p100_p6 = scmp.eq.s32.totalorder %s796_s23, 0 }
  0x24   : > { %s87_s14 = ssub.s32 %s792_s22, %s1032_s10  ;;  %p606_p4 = scmp.lt.s32.totalorder %s796_s23, 2 }
  0x25   : > { %p90_p9 = scmp.eq.s32.totalorder %s87_s14, 0  ;;  %p101_p13 = por %p100_p6, %p99_p10 }
  0x26   : > { %p919_p0 = por %p871_p2, %p99_p10  ;;  %s229_s16 = sand.u32 1, %s784_s20  }
  0x27   : > { %s925_s17 = scalar_select %p90_p9, %s784_s20, %s92_s11  }
  0x28   : > { %s562_s24 = sshll.u32 %s229_s16, 3  ;;  %s582_s25 = sshll.u32 %s792_s22, 7 }
  0x29   : > { %s241_s7 = scalar_lea.hbm %s1008_s2, %s582_s25  ;;  %s233_s9 = scalar_lea.vmem [#allocation6], %s562_s24 }
  0x2a   : > { %s243_s12 = sshll.u32 %s233_s9, 4  ;;  %p931_p11 = pnand %p606_p4, %p101_p13  ;;  %s244_s12 = int_to_ptr.vmem [resolvable:$true] %s243_s12 }
  0x2b   : > { %s230_s27 = scalar_lea.sflag [#allocation3], %s229_s16  ;;  %s697_s14 = scalar_lea.vmem %s244_s12, 128 }
  0x2c   : > { %p686_p2 = pneg %p931_p11  ;;  %p698_p12 = scmp.ne.s32.totalorder %s244_s12, %s697_s14 }
  0x2d   : > { %s799_s11 = smov [#allocation6]  }
  0x2e   : > { %p700_p3 = pnand %p698_p12, %p686_p2  ;;  %s702_s0 = sshll.u32 %s799_s11, 4  ;;  %s703_s0 = int_to_ptr.vmem [resolvable:$false] %s702_s0 }
  0x2f   : > { %s704_s30 = scalar_lea.vmem %s703_s0, 256  ;;  %p705_p7 = scmp.lt.s32.totalorder %s244_s12, %s703_s0 }
  0x30   : > { %p701_p5 = pneg %p700_p3  ;;  %p706_p10 = scmp.lt.s32.totalorder %s704_s30, %s697_s14 }
  0x32   : > { %p707_p6 = por %p706_p10, %p705_p7 }
  0x34   : > { %p708_p9 = pnand %p707_p6, %p701_p5 }
  0x36   : > { %711 = shalt.err (!%p708_p9)
}
  0x37   : > { %600 = dma.hbm_to_vmem [thread:$0]  (!%p931_p11), %s241_s7, 128, %s244_s12, %s230_s27  }
  0x38   : > { %252 = sbr.rel (%p890_p8) target bundleno = 330 (0x14a), region = 40 }
  0x3d   : > { %763 = dma.done.wait (%p867_p1), [#allocation5], 16  }
  0x3e   : > { %765 = vsyncadd (%p867_p1), [#allocation5], 4294967280  ;;  %s946_s16 = sand.u32 1, %s780_s19   ;;  %p1023_p4 = scmp.ne.s32.totalorder %s1016_s28, 0 }
  0x3f   : > { %s567_s0 = sshll.u32 %s946_s16, 3  ;;  %s259_s24 = scalar_lea.sflag [#allocation3], %s946_s16 }
  0x40   : > { %s262_s25 = scalar_lea.vmem [#allocation6], %s567_s0 }
  0x41   : > { %767 = dma.done.wait (%p1023_p4), %s259_s24, 128  }
  0x42   : > { %769 = vsyncadd (%p1023_p4), %s259_s24, 4294967168 }
  0x43   : > { %267 = sfence }
  0x44   : > { %p300_p8 = scmp.lt.s32.totalorder %s788_s21, 1  ;;  %s311_s26 = sld [smem:[#allocation2]]  ;;  %v800_v0 = vmov 0.0   ;;  %v322_v1 = vld [vmem:[%s1010_s4] sm:$0xff]  ;;  %v801_v2 = vmov 0   ;;  %vm334_vm0 = vcmask 1043456  }
  0x45   : > { %s571_s8 = sld [smem:[#allocation2 + $0x1]]  ;;  %403 = vmatprep.mubr.f32.mxu0 %v800_v0  ;;  %660 = vset.pattern.permute.xlu0 %v801_v2  ;;  %v316_v3 = vld [vmem:[%s262_s25] sm:$0xff]  ;;  %vm330_vm1 = vcmask 31744   ;;  %s568_s30 = sshll.u32 %s946_s16, 4 }
  0x46   : > { %s301_s9 = scalar_select %p300_p8, %s788_s21, 1  ;;  %325 = vperm.xlu0 %660, %v322_v1   ;;  %v321_v12 = vld [vmem:[%s1009_s3] sm:$0xff] }
  0x47   : > { %s584_s0 = sshll.u32 %s788_s21, 8  ;;  %s298_s24 = scalar_lea.vmem [#allocation7], %s568_s30 }
  0x48   : > { %s583_s12 = sshll.u32 %s301_s9, 3  ;;  %s443_s25 = sshll.u32 %s298_s24, 4  ;;  %s444_s25 = int_to_ptr.vmem [resolvable:$true] %s443_s25 }
  0x49   : > { %s307_s27 = scalar_lea.vmem %s1007_s1, %s583_s12  ;;  %s441_s6 = scalar_lea.hbm %s1011_s5, %s584_s0 }
  0x4a   : > { %v312_v4 = vld [vmem:[%s307_s27] sm:$0xff]  ;;  %v313_v5 = vstv %s311_s26  ;;  %s427_s7 = scalar_lea.sflag [#allocation4], %s946_s16  ;;  %s712_s9 = scalar_lea.vmem %s444_s25, 256 }
  0x4b   : > { %v314_v6 = vmul.f32 %v313_v5, %v312_v4  ;;  %v317_v7 = vstv %s571_s8  ;;  %p713_p1 = scmp.ne.s32.totalorder %s444_s25, %s712_s9  ;;  %s802_s12 = smov [#allocation7]  }
  0x4c   : > { %v318_v8 = vmul.f32 %v317_v7, %v316_v3  ;;  %s716_s21 = sshll.u32 %s802_s12, 4  ;;  %s717_s21 = int_to_ptr.vmem [resolvable:$false] %s716_s21 }
  0x4d   : > { %p714_p13 = pnand %p713_p1, %p919_p0  ;;  %s718_s13 = scalar_lea.vmem %s717_s21, 512 }
  0x4e   : > { %v319_v9 = vadd.f32 %v318_v8, %v314_v6  ;;  %p719_p2 = scmp.lt.s32.totalorder %s444_s25, %s717_s21  ;;  %p720_p12 = scmp.lt.s32.totalorder %s718_s13, %s712_s9 }
  0x4f   : > { %p715_p11 = pneg %p714_p13 }
  0x50   : > { %v320_v10 = vmax.f32 %v319_v9, 0.0  ;;  %p721_p3 = por %p720_p12, %p719_p2 }
  0x52   : > { %v329_v11 = vcombine.high %v320_v10, %v320_v10  ;;  %p722_p5 = pnand %p721_p3, %p715_p11 }
  0x54   : > { %572 = vmatprep.subr.msk.mxu0 %vm334_vm0, %v329_v11 }
  0x55   : > { %573 = vmatpush1.msk.msra.mxu0 %vm334_vm0, %v320_v10 }
  0x56   : > { %574 = vmatmul.mubr.msk.f32.vlgmr.msra.gmra.mxu0 %vm330_vm1, %v321_v12 }
  0xc1   : > { %v326_v13 = vpop.permute.xlu0 %325 }
 0x116   : > { %v405_v14 = vpop.f32.mrf.mxu0 }
 0x117   : > { %v406_v15 = vadd.f32 %v405_v14, %v326_v13 }
 0x118   : > { %v407_v16 = vpop.f32.mrf.mxu0 }
 0x119   : > { %v575_v17 = vmul.f32 -1.442695, %v406_v15  ;;  %v408_v18 = vadd.f32 %v407_v16, %v326_v13 }
 0x11b   : > { %661 = vpow2.f32 %v575_v17  ;;  %v576_v19 = vmul.f32 -1.442695, %v408_v18 }
 0x11d   : > { %663 = vpow2.f32 %v576_v19 }
 0x128   : > { %v662_v20 = vpop.eup %661 }
 0x129   : > { %v416_v21 = vadd.f32 1.0, %v662_v20 }
 0x12a   : > { %v664_v22 = vpop.eup %663 }
 0x12b   : > { %665 = vrcp.f32 %v416_v21  ;;  %v417_v23 = vadd.f32 1.0, %v664_v22 }
 0x12d   : > { %667 = vrcp.f32 %v417_v23 }
 0x138   : > { %v666_v24 = vpop.eup %665 }
 0x139   : > { %v422_v25 = vmul.f32 %v666_v24, %v406_v15 }
 0x13a   : > { %v668_v26 = vpop.eup %667 }
 0x13b   : > { %424 = vst [vmem:[%s298_s24] sm:$0xff] %v422_v25  ;;  %v423_v27 = vmul.f32 %v668_v26, %v408_v18 }
 0x13d   : > { %425 = vst [vmem:[%s298_s24 + $0x8] sm:$0xff] %v423_v27 }
 0x13e   : > { %725 = shalt.err (!%p722_p5)
}
 0x13f   : > { %s726_s28 = scalar_lea.hbm %s441_s6, 256  ;;  %s730_s14 = scalar_lea.hbm %s1011_s5, 512 }
 0x140   : > { %p727_p7 = scmp.ne.s32.totalorder %s441_s6, %s726_s28  ;;  %p731_p9 = scmp.lt.s32.totalorder %s441_s6, %s1011_s5 }
 0x141   : > { %p732_p4 = scmp.lt.s32.totalorder %s730_s14, %s726_s28 }
 0x142   : > { %p728_p10 = pnand %p727_p7, %p919_p0 }
 0x143   : > { %p733_p8 = por %p732_p4, %p731_p9 }
 0x144   : > { %p729_p6 = pneg %p728_p10 }
 0x146   : > { %p734_p1 = pnand %p733_p8, %p729_p6 }
 0x148   : > { %737 = shalt.err (!%p734_p1)
}
 0x149   : > { %591 = dma.vmem_to_hbm [thread:$0]  (%p919_p0), %s444_s25, 256, %s441_s6, %s427_s7  }
 0x14a PF: > { %s455_s0 = sand.u32 1, %s776_s18   ;;  %p1024_p13 = scmp.ne.s32.totalorder %s1017_s29, 0 }
 0x14b   : > { %p1025_p11 = scmp.ge.s32.totalorder %s796_s23, 2  ;;  %s456_s24 = scalar_lea.sflag [#allocation4], %s455_s0 }
 0x14d   : > { %p602_p2 = pnand %p1025_p11, %p1024_p13 }
 0x14f   : > { %p603_p12 = pneg %p602_p2 }
 0x151   : > { %771 = dma.done.wait (%p603_p12), %s456_s24, 256  }
 0x152   : > { %773 = vsyncadd (%p603_p12), %s456_s24, 4294967040  ;;  %s22_s23 = sadd.s32 1, %s796_s23   ;;  %s1026_s18 = smov %s780_s19 }
 0x153   : > { %p19_p3 = scmp.ge.s32.totalorder %s22_s23, 4   ;;  %s1027_s19 = smov %s784_s20 }
 0x154   : > { %s1028_s20 = smov %s925_s17  ;;  %s1029_s21 = smov %s792_s22 }
 0x155   : > { %s1030_s22 = smov %s1032_s10  ;;  %21 = sbr.rel (!%p19_p3) target bundleno = 9 (0x9), region = 93 }
 0x15a   :  { %461 = vsyncpa [#allocation3], 1 }
 0x15b   :  { %463 = vsyncpa [#allocation3 + $0x1], 1 }
 0x15c   :  { %464 = vsyncpa [#allocation4], 1 }
 0x15d   :  { %466 = vsyncpa [#allocation4 + $0x1], 1 }
 0x15e   :  { %467 = vsyncpa [#allocation5], 1 }
 0x15f   :  { %469 = vsyncpa [#allocation5 + $0x1], 1 }

</bundles_post_ra>
